<compile_context>
chip_gen: v6e
topology: v6e:2x2x1
jax: 0.10.0
libtpu: 0.0.40
codegen_flags: <defaults>
</compile_context>

<pallas_src>
import functools
import math

import jax
import jax.numpy as jnp
from jax.experimental import pallas as pl
from jax.experimental.pallas import tpu as pltpu


def _diff_kernel(x_ref, w_ref, o_ref):
    """theta != 0 hot path:  out = x - W_sum @ x  (channel mix along C, fused subtract).

    x_ref: (TN, C, TL) block of x in (N, C, L) layout (L on lanes).
    w_ref: (C_out, C_in) summed conv weight, w[o, c] = weight[o, c, :].sum().
    o_ref: (TN, C, TL) output block.
    """
    x = x_ref[...].astype(jnp.float32)           # (TN, C, TL)
    w = w_ref[...].astype(jnp.float32)           # (C_out, C_in)
    c_in = w.shape[1]
    # y[n, o, l] = sum_c w[o, c] * x[n, c, l]  -- unrolled VPU FMAs (C is small).
    y = w[None, :, 0:1] * x[:, 0:1, :]
    for c in range(1, c_in):
        y = y + w[None, :, c:c + 1] * x[:, c:c + 1, :]
    o_ref[...] = (x - y).astype(o_ref.dtype)


def _conv1d_kernel(x_ref, w_ref, b_ref, o_ref, *, K):
    """theta ~= 0 path: 'same'-padded K-tap conv1d, halo handled in-kernel.

    x_ref: (1, C_in, L) one batch element (L on lanes).
    w_ref: (C_out, K * C_in) with column t*C_in + c holding weight[:, c, t].
    b_ref: (C_out, 1) bias (zeros if the conv has no bias).
    o_ref: (1, C_out, L).
    """
    x = x_ref[0].astype(jnp.float32)             # (C_in, L)
    w = w_ref[...].astype(jnp.float32)           # (C_out, K*C_in)
    c_in, L = x.shape
    c_out = o_ref.shape[1]
    pad = K // 2
    lane = jax.lax.broadcasted_iota(jnp.int32, (c_in, L), 1)
    acc = jnp.zeros((c_out, L), jnp.float32)
    for t in range(K):                           # K is small & static -> unrolled
        s = t - pad
        if s == 0:
            xs = x
        else:
            # xs[c, l] = x[c, l + s], zero outside [0, L)  ('same' padding in-kernel).
            xs = pltpu.roll(x, shift=(-s) % L, axis=1)
            xs = jnp.where((lane + s >= 0) & (lane + s < L), xs, 0.0)
        for c in range(c_in):
            j = t * c_in + c
            acc = acc + w[:, j:j + 1] * xs[c:c + 1, :]
    o_ref[0] = (acc + b_ref[...].astype(jnp.float32)).astype(o_ref.dtype)


def _pick_tiles(N, C, L, itemsize, target_bytes=2 * 1024 * 1024):
    """Pick (TN, TL): lane-dense TL (multiple of 128 or full L) and enough batch rows
    per block (~2 MiB) to amortize per-grid-step overhead, well under v7x VMEM."""
    TL = L if L <= 1024 else 1024                # 1024 is a multiple of 128
    per_n = max(1, C * TL * itemsize)
    TN = int(max(1, min(N, target_bytes // per_n)))
    return TN, TL


def linear_cd_forward(x, weight, bias=None, theta=0.5):
    """x: (N, C_in, L); weight: (C_out, C_in, K); bias: (C_out,) or None.

    Note: the PyTorch module does not forward its `bias` arg to nn.Conv1d, so its conv
    branch carries a bias by default; the theta != 0 branch never uses the bias (nor the
    value of theta) -- exactly as in the reference module.
    """
    N, C_in, L = x.shape
    C_out, C_in_w, K = weight.shape
    assert C_in_w == C_in

    if math.fabs(theta - 0.0) < 1e-8:
        # out_normal = conv1d(x), stride=1, padding=K//2 ('same'), + bias.
        # Repack weight so column t*C_in + c == weight[:, c, t] (lane-sliceable (C_out,1)).
        w_flat = jnp.transpose(weight, (0, 2, 1)).reshape(C_out, K * C_in)
        b = (jnp.zeros((C_out, 1), jnp.float32) if bias is None
             else bias.reshape(C_out, 1).astype(jnp.float32))
        # TODO(synk): tile L with a (K-1)-column halo for very long sequences; with C=4
        # a full-L block is only 16*L bytes so one batch element per step is fine here.
        return pl.pallas_call(
            functools.partial(_conv1d_kernel, K=K),
            out_shape=jax.ShapeDtypeStruct((N, C_out, L), x.dtype),
            grid=(N,),
            in_specs=[
                pl.BlockSpec((1, C_in, L), lambda n: (n, 0, 0)),
                pl.BlockSpec((C_out, K * C_in), lambda n: (0, 0)),
                pl.BlockSpec((C_out, 1), lambda n: (0, 0)),
            ],
            out_specs=pl.BlockSpec((1, C_out, L), lambda n: (n, 0, 0)),
            compiler_params=pltpu.CompilerParams(
                dimension_semantics=("parallel",)),
        )(x, w_flat, b)

    # theta != 0 (module default): out = x - conv1d(x, weight.sum(2)[:, :, None]).
    # (No bias; theta's value is unused beyond the branch -- exactly as in PyTorch.)
    assert C_in == C_out, "x - out_diff requires in_channels == out_channels"
    w_sum = jnp.sum(weight, axis=2)              # (C_out, C_in)

    TN, TL = _pick_tiles(N, C_in, L, x.dtype.itemsize)
    grid = (pl.cdiv(N, TN), pl.cdiv(L, TL))
    return pl.pallas_call(
        _diff_kernel,
        out_shape=jax.ShapeDtypeStruct((N, C_out, L), x.dtype),
        grid=grid,
        in_specs=[
            pl.BlockSpec((TN, C_in, TL), lambda i, j: (i, 0, j)),
            pl.BlockSpec((C_out, C_in), lambda i, j: (0, 0)),
        ],
        out_specs=pl.BlockSpec((TN, C_out, TL), lambda i, j: (i, 0, j)),
        compiler_params=pltpu.CompilerParams(
            dimension_semantics=("parallel", "parallel")),
    )(x, w_sum)


if __name__ == "__main__":
    # Module config: Linear_cd(in_channels=4, out_channels=4, kernel_size=3, theta=0.5)
    N, C, L, K = 2, 4, 16, 3
    key = jax.random.PRNGKey(0)
    kx, kw, kb = jax.random.split(key, 3)
    x = jax.random.normal(kx, (N, C, L), dtype=jnp.float32)            # (N, C_in, L)
    bound = 1.0 / math.sqrt(C * K)
    weight = jax.random.uniform(kw, (C, C, K), jnp.float32, -bound, bound)  # (C_out, C_in, K)
    bias = jax.random.uniform(kb, (C,), jnp.float32, -bound, bound)

    # theta = 0.5 (module default): out = x - conv1d(x, weight.sum(2)[:, :, None])
    out = jax.block_until_ready(linear_cd_forward(x, weight, bias=bias, theta=0.5))
    w_sum = jnp.sum(weight, axis=2)                                    # (C_out, C_in)
    ref = x - jnp.einsum("ncl,oc->nol", x, w_sum)
    assert out.shape == (N, C, L)
    assert jnp.allclose(out, ref, atol=1e-5, rtol=1e-5)

    # theta ~= 0 branch: plain conv1d with 'same' padding and bias.
    out0 = jax.block_until_ready(linear_cd_forward(x, weight, bias=bias, theta=0.0))
    xp = jnp.pad(x, ((0, 0), (0, 0), (K // 2, K // 2)))
    conv_ref = sum(jnp.einsum("ncl,oc->nol", xp[:, :, t:t + L], weight[:, :, t])
                   for t in range(K)) + bias[None, :, None]
    assert out0.shape == (N, C, L)
    assert jnp.allclose(out0, conv_ref, atol=1e-5, rtol=1e-5)

    print("KERNEL_OK")
</pallas_src>

<mosaic_0001>
module attributes {stable_mosaic.version = 11 : i64} {
  func.func @_diff_kernel(%arg0: i32, %arg1: i32, %arg2: memref<2x4x16xf32, #tpu.memory_space<vmem>>, %arg3: memref<4x4xf32, #tpu.memory_space<vmem>>, %arg4: memref<2x4x16xf32, #tpu.memory_space<vmem>>) attributes {dimension_semantics = [#tpu.dimension_semantics<parallel>, #tpu.dimension_semantics<parallel>], iteration_bounds = array<i64: 1, 1>, scalar_prefetch = 0 : i64, scratch_operands = 0 : i64, tpu.core_type = #tpu.core_type<tc>, window_params = [{transform_indices = @transform_0, window_bounds = array<i64: 2, 4, 16>}, {pipeline_mode = #tpu.pipeline_mode<synchronous>, transform_indices = @transform_1, window_bounds = array<i64: 4, 4>}, {transform_indices = @transform_2, window_bounds = array<i64: 2, 4, 16>}]} {
    %c0 = arith.constant 0 : index
    %c0_0 = arith.constant 0 : index
    %c0_1 = arith.constant 0 : index
    %0 = vector.load %arg2[%c0, %c0_0, %c0_1] : memref<2x4x16xf32, #tpu.memory_space<vmem>>, vector<2x4x16xf32>
    %c0_2 = arith.constant 0 : index
    %c0_3 = arith.constant 0 : index
    %1 = vector.load %arg3[%c0_2, %c0_3] : memref<4x4xf32, #tpu.memory_space<vmem>>, vector<4x4xf32>
    %2 = vector.extract_strided_slice %1 {offsets = [0, 0], sizes = [4, 1], strides = [1, 1]} : vector<4x4xf32> to vector<4x1xf32>
    %3 = vector.shape_cast %2 : vector<4x1xf32> to vector<1x4x1xf32>
    %4 = vector.extract_strided_slice %0 {offsets = [0, 0, 0], sizes = [2, 1, 16], strides = [1, 1, 1]} : vector<2x4x16xf32> to vector<2x1x16xf32>
    %5 = vector.broadcast %3 : vector<1x4x1xf32> to vector<2x4x16xf32>
    %6 = vector.broadcast %4 : vector<2x1x16xf32> to vector<2x4x16xf32>
    %7 = arith.mulf %5, %6 : vector<2x4x16xf32>
    %8 = vector.extract_strided_slice %1 {offsets = [0, 1], sizes = [4, 1], strides = [1, 1]} : vector<4x4xf32> to vector<4x1xf32>
    %9 = vector.shape_cast %8 : vector<4x1xf32> to vector<1x4x1xf32>
    %10 = vector.extract_strided_slice %0 {offsets = [0, 1, 0], sizes = [2, 1, 16], strides = [1, 1, 1]} : vector<2x4x16xf32> to vector<2x1x16xf32>
    %11 = vector.broadcast %9 : vector<1x4x1xf32> to vector<2x4x16xf32>
    %12 = vector.broadcast %10 : vector<2x1x16xf32> to vector<2x4x16xf32>
    %13 = arith.mulf %11, %12 : vector<2x4x16xf32>
    %14 = arith.addf %7, %13 : vector<2x4x16xf32>
    %15 = vector.extract_strided_slice %1 {offsets = [0, 2], sizes = [4, 1], strides = [1, 1]} : vector<4x4xf32> to vector<4x1xf32>
    %16 = vector.shape_cast %15 : vector<4x1xf32> to vector<1x4x1xf32>
    %17 = vector.extract_strided_slice %0 {offsets = [0, 2, 0], sizes = [2, 1, 16], strides = [1, 1, 1]} : vector<2x4x16xf32> to vector<2x1x16xf32>
    %18 = vector.broadcast %16 : vector<1x4x1xf32> to vector<2x4x16xf32>
    %19 = vector.broadcast %17 : vector<2x1x16xf32> to vector<2x4x16xf32>
    %20 = arith.mulf %18, %19 : vector<2x4x16xf32>
    %21 = arith.addf %14, %20 : vector<2x4x16xf32>
    %22 = vector.extract_strided_slice %1 {offsets = [0, 3], sizes = [4, 1], strides = [1, 1]} : vector<4x4xf32> to vector<4x1xf32>
    %23 = vector.shape_cast %22 : vector<4x1xf32> to vector<1x4x1xf32>
    %24 = vector.extract_strided_slice %0 {offsets = [0, 3, 0], sizes = [2, 1, 16], strides = [1, 1, 1]} : vector<2x4x16xf32> to vector<2x1x16xf32>
    %25 = vector.broadcast %23 : vector<1x4x1xf32> to vector<2x4x16xf32>
    %26 = vector.broadcast %24 : vector<2x1x16xf32> to vector<2x4x16xf32>
    %27 = arith.mulf %25, %26 : vector<2x4x16xf32>
    %28 = arith.addf %21, %27 : vector<2x4x16xf32>
    %29 = arith.subf %0, %28 : vector<2x4x16xf32>
    %c0_4 = arith.constant 0 : index
    %c0_5 = arith.constant 0 : index
    %c0_6 = arith.constant 0 : index
    %30 = vector.load %arg4[%c0_4, %c0_5, %c0_6] : memref<2x4x16xf32, #tpu.memory_space<vmem>>, vector<2x4x16xf32>
    tpu.vector_store %arg4[%c0_4, %c0_5, %c0_6], %29 {strides = array<i32>} : memref<2x4x16xf32, #tpu.memory_space<vmem>>, vector<2x4x16xf32>,
    return
  }
  func.func @transform_0(%arg0: i32, %arg1: i32) -> (i32, i32, i32) {
    %c0_i32 = arith.constant 0 : i32
    %c0_i32_0 = arith.constant 0 : i32
    return %arg0, %c0_i32, %arg1 : i32, i32, i32
  }
  func.func @transform_1(%arg0: i32, %arg1: i32) -> (i32, i32) {
    %c0_i32 = arith.constant 0 : i32
    %c0_i32_0 = arith.constant 0 : i32
    %c0_i32_1 = arith.constant 0 : i32
    return %c0_i32, %c0_i32_0 : i32, i32
  }
  func.func @transform_2(%arg0: i32, %arg1: i32) -> (i32, i32, i32) {
    %c0_i32 = arith.constant 0 : i32
    %c0_i32_0 = arith.constant 0 : i32
    return %arg0, %c0_i32, %arg1 : i32, i32, i32
  }
}

</mosaic_0001>

<bundles_post_ra>
// kernel: tpu_custom_call.1
= control target key start
LH: loop header
LB: loop body
LE: loop exit
PB: predicated region body
PF: predicated region fallthrough
CT: control target
= control target key end

     0   :  { %7 = vsyncpa [#allocation3], 0  ;;  %s246_s0 = inlined_call_operand.hbm [shape: f32[2,4,16], index: 0, kind: input, shape index: {}]   ;;  %s247_s1 = inlined_call_operand.hbm [shape: f32[4,4], index: 1, kind: input, shape index: {}]   ;;  %s248_s2 = inlined_call_operand.hbm [shape: f32[2,4,16], index: 2, kind: output, shape index: {}]  }
   0x1   :  { %8 = vsyncpa [#allocation6], 0 }
   0x2   :  { %9 = vsyncpa [#allocation4], 0  ;;  %s207_s9 = smov [#allocation2]  }
   0x3   :  { %s15_s10 = sshll.u32 %s207_s9, 4  ;;  %s16_s10 = int_to_ptr.vmem [resolvable:$true] %s15_s10 }
   0x4   :  { %s149_s11 = scalar_lea.vmem %s16_s10, 128  ;;  %p154_p1 = scmp.lt.s32.totalorder %s16_s10, %s16_s10 }
   0x5   :  { %p150_p0 = scmp.ne.s32.totalorder %s16_s10, %s149_s11  ;;  %p155_p2 = scmp.lt.s32.totalorder %s149_s11, %s149_s11 }
   0x7   :  { %p156_p3 = por %p155_p2, %p154_p1 }
   0x9   :  { %p157_p4 = pnand %p156_p3, %p150_p0 }
   0xb   :  { %160 = shalt.err (!%p157_p4)
}
   0xc   :  { %s208_s12 = smov 64   ;;  %s209_s13 = smov 4  }
   0xd   :  { %21 = dma.hbm_to_vmem [thread:$0]  %s246_s0, 128, %s16_s10, [#allocation3], %s208_s12, %s208_s12, %s209_s13  }
   0xe   :  { %s210_s16 = smov [#allocation5]  }
   0xf   :  { %s28_s17 = sshll.u32 %s210_s16, 4  ;;  %s29_s17 = int_to_ptr.vmem [resolvable:$true] %s28_s17 }
  0x10   :  { %s169_s18 = scalar_lea.vmem %s29_s17, 64  ;;  %p174_p6 = scmp.lt.s32.totalorder %s29_s17, %s29_s17 }
  0x11   :  { %p170_p5 = scmp.ne.s32.totalorder %s29_s17, %s169_s18  ;;  %p175_p7 = scmp.lt.s32.totalorder %s169_s18, %s169_s18 }
  0x13   :  { %p176_p8 = por %p175_p7, %p174_p6 }
  0x15   :  { %p177_p9 = pnand %p176_p8, %p170_p5 }
  0x17   :  { %180 = shalt.err (!%p177_p9)
}
  0x18   :  { %31 = dma.hbm_to_vmem [thread:$0]  %s247_s1, 64, %s29_s17, [#allocation6]  }
  0x19   :  { %201 = dma.done.wait [#allocation3], 128  }
  0x1a   :  { %202 = vsyncadd [#allocation3], 4294967168 }
  0x1b   :  { %203 = dma.done.wait [#allocation6], 64  }
  0x1c   :  { %204 = vsyncadd [#allocation6], 4294967232  ;;  %v211_v0 = vmov 0   ;;  %v212_v1 = vmov 2   ;;  %v40_v2 = vld [vmem:[#allocation5] sm:$0xf]  ;;  %v46_v5 = vlaneseq }
  0x1d   :  { %136 = vset.pattern.permute.xlu0 %v211_v0  ;;  %138 = vset.pattern.permute.xlu1 %v212_v1  ;;  %v213_v3 = vmov 1   ;;  %v214_v4 = vmov 3   ;;  %v38_v9 = vld [vmem:[#allocation2] sm:$0xf]  ;;  %v39_v10 = vld [vmem:[#allocation2 + $0x4] sm:$0xf] }
  0x1e   :  { %43 = vperm.xlu0 %136, %v40_v2   ;;  %73 = vperm.xlu1 %138, %v40_v2   ;;  %v47_v6 = vshrl.u32 %v46_v5, 7  ;;  %s215_s0 = smov [#allocation7]   ;;  %vm106_vm0 = vcmask 125952  }
  0x1f   :  { %s114_s1 = sshll.u32 %s215_s0, 4  ;;  %s115_s1 = int_to_ptr.vmem [resolvable:$true] %s114_s1 }
  0x20   :  { %v48_v7 = vsub.s32 0, %v47_v6  ;;  %v62_v8 = vsub.s32 1, %v47_v6  ;;  %v78_v11 = vsub.s32 2, %v47_v6  ;;  %v94_v14 = vsub.s32 3, %v47_v6  ;;  %s181_s21 = scalar_lea.vmem %s115_s1, 128  ;;  %p186_p11 = scmp.lt.s32.totalorder %s115_s1, %s115_s1 }
  0x21   :  { %p182_p10 = scmp.ne.s32.totalorder %s115_s1, %s181_s21  ;;  %p187_p12 = scmp.lt.s32.totalorder %s181_s21, %s181_s21 }
  0x22   :  { %137 = vset.pattern.permute.xlu0 %v213_v3  ;;  %139 = vset.pattern.permute.xlu1 %v214_v4  ;;  %v49_v15 = vrot.slane %v38_v9, %v48_v7  ;;  %v53_v16 = vrot.slane %v39_v10, %v48_v7  ;;  %v63_v17 = vrot.slane %v38_v9, %v62_v8 }
  0x23   :  { %57 = vperm.xlu0 %137, %v40_v2   ;;  %89 = vperm.xlu1 %139, %v40_v2   ;;  %v67_v18 = vrot.slane %v39_v10, %v62_v8  ;;  %v79_v19 = vrot.slane %v38_v9, %v78_v11  ;;  %v83_v20 = vrot.slane %v39_v10, %v78_v11  ;;  %p188_p13 = por %p187_p12, %p186_p11 }
  0x24   :  { %v95_v21 = vrot.slane %v38_v9, %v94_v14  ;;  %v99_v22 = vrot.slane %v39_v10, %v94_v14 }
  0x25   :  { %p189_p0 = pnand %p188_p13, %p182_p10 }
  0x27   :  { %140 = vset.pattern.permute.xlu0 %v214_v4 }
  0x99   :  { %v44_v12 = vpop.permute.xlu0 %43  ;;  %v74_v13 = vpop.permute.xlu1 %73 }
  0x9a   :  { %v54_v25 = vmul.f32 %v49_v15, %v44_v12  ;;  %v55_v26 = vmul.f32 %v53_v16, %v44_v12  ;;  %v84_v29 = vmul.f32 %v79_v19, %v74_v13  ;;  %v85_v30 = vmul.f32 %v83_v20, %v74_v13 }
  0x9e   :  { %v58_v23 = vpop.permute.xlu0 %57  ;;  %v90_v24 = vpop.permute.xlu1 %89 }
  0x9f   :  { %v68_v27 = vmul.f32 %v63_v17, %v58_v23  ;;  %v69_v28 = vmul.f32 %v67_v18, %v58_v23  ;;  %v100_v33 = vmul.f32 %v95_v21, %v90_v24  ;;  %v101_v34 = vmul.f32 %v99_v22, %v90_v24 }
  0xa1   :  { %v70_v31 = vadd.f32 %v68_v27, %v54_v25  ;;  %v71_v32 = vadd.f32 %v69_v28, %v55_v26 }
  0xa3   :  { %v86_v35 = vadd.f32 %v84_v29, %v70_v31  ;;  %v87_v36 = vadd.f32 %v85_v30, %v71_v32 }
  0xa5   :  { %v102_v37 = vadd.f32 %v100_v33, %v86_v35  ;;  %v103_v38 = vadd.f32 %v101_v34, %v87_v36 }
  0xa7   :  { %v104_v39 = vsub.f32 %v38_v9, %v102_v37  ;;  %v105_v40 = vsub.f32 %v39_v10, %v103_v38 }
  0xa9   :  { %107 = vst.msk [vmem:[#allocation7] sm:$0xf] %vm106_vm0, %v104_v39  ;;  %108 = vst.msk [vmem:[#allocation7 + $0x4] sm:$0xf] %vm106_vm0, %v105_v40 }
  0xaa   :  { %192 = shalt.err (!%p189_p0)
}
  0xab   :  { %120 = dma.vmem_to_hbm [thread:$0]  %s115_s1, 128, %s248_s2, [#allocation4], %s208_s12, %s208_s12, %s209_s13  }
  0xac   :  { %205 = dma.done.wait [#allocation4], 128  }
  0xad   :  { %206 = vsyncadd [#allocation4], 4294967168 }
  0xae   :  { %124 = vsyncpa [#allocation3], 1 }
  0xaf   :  { %125 = vsyncpa [#allocation6], 1 }
  0xb0   :  { %126 = vsyncpa [#allocation4], 1 }

</bundles_post_ra>
